<compile_context>
chip_gen: v7x
topology: tpu7x:2x2x1
jax: 0.10.0
libtpu: 0.0.40
codegen_flags: <defaults>
</compile_context>

<pallas_src>
import functools
import math

import jax
import jax.numpy as jnp
from jax import lax
from jax.experimental import pallas as pl
from jax.experimental.pallas import tpu as pltpu


# ----------------------------- configuration -----------------------------

D_MODEL = 64
MAX_LEN = 32
PAD_IDX = 0
EMBEDDING_SIZES = [16, 32, 32, 40, 48, 24, 24, 16]

TOKENS_PER_TILE_TARGET = 512   # ~85% HBM roofline regime; tiny VMEM footprint
LANE = 128
SUBLANE = 8


def octuple_embed_dims(d_model):
    """Replicates the dim split in OctupleEmbedding.__init__."""
    d_embed = d_model // 8
    program_d_embed = 4
    pitch_d_embed = (3 * d_embed - program_d_embed) // 2
    dur_d_embed = 3 * d_embed - program_d_embed - pitch_d_embed
    dims = [program_d_embed, d_embed, d_embed, pitch_d_embed,
            dur_d_embed, d_embed, d_embed, d_embed]
    assert sum(dims) == d_model
    return dims


def sinusoid_positional_encoding(max_len, d_model):
    """Standard sinusoid PE buffer: (max_len, d_model)."""
    pos = jnp.arange(max_len, dtype=jnp.float32)[:, None]
    two_i = jnp.arange(0, d_model, 2, dtype=jnp.float32)[None, :]
    angles = pos / jnp.power(10000.0, two_i / d_model)
    pe = jnp.zeros((max_len, d_model), dtype=jnp.float32)
    pe = pe.at[:, 0::2].set(jnp.sin(angles))
    pe = pe.at[:, 1::2].set(jnp.cos(angles))
    return pe


# ------------------------------- the kernel -------------------------------

def _octuple_kernel(ids_ref,    # (TM, 8)  int32, offset-adjusted token ids
                    tab_ref,    # (padded_vocab, d_model) bf16 fused table
                    posb_ref,   # (TM, d_model) f32  (pos + fc bias, per-tile)
                    out_ref,    # (TM, d_model) f32
                    *, padded_vocab):
    ids = ids_ref[...]                                          # (TM, 8)
    tm, n_fields = ids.shape

    # Disjoint row ranges per field -> OR-accumulate bool compares, cast once.
    iota = lax.broadcasted_iota(jnp.int32, (tm, padded_vocab), 1)
    hit = ids[:, 0][:, None] == iota
    for f in range(1, n_fields):
        hit = jnp.logical_or(hit, ids[:, f][:, None] == iota)
    multihot = hit.astype(jnp.bfloat16)                         # 0/1 exact

    # Single bf16 MXU matmul (f32 accumulate) replaces 8 gathers + concat + fc;
    # fc bias is pre-folded into posb_ref.
    out_ref[...] = jnp.dot(multihot, tab_ref[...],
                           preferred_element_type=jnp.float32) + posb_ref[...]
    # TODO(synk): nn.Dropout omitted (eval-mode identity; no stochastic drop).


# ------------------------------- the wrapper -------------------------------

def octuple_embedding(x, tables, w_t, b, pos):
    """x: (B, S, 8) int32.  Returns (B, S, d_model) float32.

    tables: list of 8 arrays (V_i, d_i); w_t: (d_model, d_model) = fc weight
    pre-transposed (y = x @ w_t + b); pos: (S, d_model) sinusoid PE slice.
    """
    B, S, n_fields = x.shape
    d_model = w_t.shape[1]
    vocab_sizes = [int(t.shape[0]) for t in tables]
    dims = [int(t.shape[1]) for t in tables]
    total_vocab = sum(vocab_sizes)
    padded_vocab = ((total_vocab + LANE - 1) // LANE) * LANE    # 232 -> 256
    tokens = B * S

    # --- parameter pre-fusion (exact algebra, done once in plain XLA) ------
    fused_parts, row = [], 0
    for tab, d_i in zip(tables, dims):
        fused_parts.append(
            jnp.dot(tab, w_t[row:row + d_i, :], precision=lax.Precision.HIGHEST))
        row += d_i
    fused_tab = jnp.concatenate(fused_parts, axis=0)            # (232, d_model)
    fused_tab = jnp.pad(fused_tab, ((0, padded_vocab - total_vocab), (0, 0)))
    fused_tab = fused_tab.astype(jnp.bfloat16)                  # (256, d_model)

    # Cumulative vocab offsets so each field indexes its own row range.
    offs, acc = [], 0
    for v in vocab_sizes:
        offs.append(acc)
        acc += v
    offsets = jnp.asarray(offs, dtype=jnp.int32)                # (8,)
    x_off = x.reshape(tokens, n_fields).astype(jnp.int32) + offsets[None, :]

    # --- token tile: whole sequences per tile, multiple of 8 sublanes ------
    base = S * (SUBLANE // math.gcd(S, SUBLANE))                # mult of S and 8
    tm = base * max(1, TOKENS_PER_TILE_TARGET // base)
    tokens_rounded = ((tokens + base - 1) // base) * base
    tm = min(tm, tokens_rounded)                                # no huge padding
    tokens_padded = ((tokens + tm - 1) // tm) * tm
    num_tiles = tokens_padded // tm

    if tokens_padded != tokens:
        x_off = jnp.pad(x_off, ((0, tokens_padded - tokens), (0, 0)))

    # pos + fc bias for ONE tile (tm is a whole number of sequences); reused
    # by every grid step via a constant index_map -> stays VMEM-resident.
    posb_tile = jnp.tile(pos, (tm // S, 1)) + b[None, :]        # (tm, d_model)

    kernel = functools.partial(_octuple_kernel, padded_vocab=padded_vocab)

    cost = pl.CostEstimate(
        flops=2 * tokens_padded * padded_vocab * d_model,
        transcendentals=0,
        bytes_accessed=(tokens_padded * (n_fields * 4 + d_model * 4)
                        + padded_vocab * d_model * 2
                        + tm * d_model * 4),
    )

    out = pl.pallas_call(
        kernel,
        out_shape=jax.ShapeDtypeStruct((tokens_padded, d_model), jnp.float32),
        grid=(num_tiles,),
        in_specs=[
            pl.BlockSpec((tm, n_fields), lambda i: (i, 0)),          # ids
            pl.BlockSpec((padded_vocab, d_model), lambda i: (0, 0)),  # table
            pl.BlockSpec((tm, d_model), lambda i: (0, 0)),            # pos+bias
        ],
        out_specs=pl.BlockSpec((tm, d_model), lambda i: (i, 0)),
        compiler_params=pltpu.CompilerParams(
            dimension_semantics=("parallel",),
            vmem_limit_bytes=32 * 1024 * 1024),
        cost_estimate=cost,
    )(x_off, fused_tab, posb_tile)

    return out[:tokens].reshape(B, S, d_model)


# -------------------------- reference (plain JAX) --------------------------

def reference(x, tables, w_t, b, pos):
    parts = [tab[x[:, :, i]] for i, tab in enumerate(tables)]
    emb_cat = jnp.concatenate(parts, axis=-1)
    lin = jnp.dot(emb_cat, w_t, precision=lax.Precision.HIGHEST) + b
    return lin + pos[None, :, :]


# ---------------------------------- main ----------------------------------

if __name__ == "__main__":
    key = jax.random.PRNGKey(0)
    B, S = 2, 8
    dims = octuple_embed_dims(D_MODEL)

    # Deterministic parameter init (padding_idx row zeroed, like nn.Embedding).
    tables = []
    for i, (vocab, d_i) in enumerate(zip(EMBEDDING_SIZES, dims)):
        k = jax.random.fold_in(key, i)
        tab = jax.random.normal(k, (vocab, d_i), dtype=jnp.float32) * 0.02
        tab = tab.at[PAD_IDX].set(0.0)
        tables.append(tab)

    kw, kb, kx = (jax.random.fold_in(key, 100 + j) for j in range(3))
    # nn.Linear: y = x @ W.T + b ; pass W.T directly.
    w_t = jax.random.normal(kw, (D_MODEL, D_MODEL), dtype=jnp.float32) * 0.05
    b = jax.random.normal(kb, (D_MODEL,), dtype=jnp.float32) * 0.01

    pos_full = sinusoid_positional_encoding(MAX_LEN, D_MODEL)
    pos = pos_full[:S, :]                                   # (S, d_model)

    # Token ids: (B, S, 8), each field bounded by its vocab size.
    x_cols = []
    for i, vocab in enumerate(EMBEDDING_SIZES):
        kc = jax.random.fold_in(kx, i)
        x_cols.append(jax.random.randint(kc, (B, S, 1), 0, vocab, dtype=jnp.int32))
    x = jnp.concatenate(x_cols, axis=-1)

    out = octuple_embedding(x, tables, w_t, b, pos)
    out = jax.block_until_ready(out)

    ref = reference(x, tables, w_t, b, pos)
    assert out.shape == (B, S, D_MODEL)
    # bf16 fused table introduces ~2^-9 relative rounding on the linear part;
    # pos (f32) is added exactly, so 1e-3 is comfortably tight.
    assert jnp.allclose(out, ref, atol=1e-3, rtol=1e-3)

    print("KERNEL_OK")
</pallas_src>

<mosaic_0001>
module attributes {stable_mosaic.version = 11 : i64} {
  func.func @_octuple_kernel(%arg0: i32, %arg1: memref<16x8xi32, #tpu.memory_space<vmem>>, %arg2: memref<256x64xbf16, #tpu.memory_space<vmem>>, %arg3: memref<16x64xf32, #tpu.memory_space<vmem>>, %arg4: memref<16x64xf32, #tpu.memory_space<vmem>>) attributes {dimension_semantics = [#tpu.dimension_semantics<parallel>], iteration_bounds = array<i64: 1>, scalar_prefetch = 0 : i64, scratch_operands = 0 : i64, tpu.core_type = #tpu.core_type<tc>, window_params = [{transform_indices = @transform_0, window_bounds = array<i64: 16, 8>}, {pipeline_mode = #tpu.pipeline_mode<synchronous>, transform_indices = @transform_1, window_bounds = array<i64: 256, 64>}, {pipeline_mode = #tpu.pipeline_mode<synchronous>, transform_indices = @transform_2, window_bounds = array<i64: 16, 64>}, {transform_indices = @transform_3, window_bounds = array<i64: 16, 64>}]} {
    %c0 = arith.constant 0 : index
    %c0_0 = arith.constant 0 : index
    %0 = vector.load %arg1[%c0, %c0_0] : memref<16x8xi32, #tpu.memory_space<vmem>>, vector<16x8xi32>
    %1 = tpu.iota {dimensions = array<i32: 1>} : vector<16x256xi32>
    %2 = vector.extract_strided_slice %0 {offsets = [0, 0], sizes = [16, 1], strides = [1, 1]} : vector<16x8xi32> to vector<16x1xi32>
    %3 = vector.shape_cast %2 : vector<16x1xi32> to vector<16xi32>
    %4 = vector.shape_cast %3 : vector<16xi32> to vector<16x1xi32>
    %5 = vector.broadcast %4 : vector<16x1xi32> to vector<16x256xi32>
    %6 = arith.cmpi eq, %5, %1 : vector<16x256xi32>
    %7 = vector.extract_strided_slice %0 {offsets = [0, 1], sizes = [16, 1], strides = [1, 1]} : vector<16x8xi32> to vector<16x1xi32>
    %8 = vector.shape_cast %7 : vector<16x1xi32> to vector<16xi32>
    %9 = vector.shape_cast %8 : vector<16xi32> to vector<16x1xi32>
    %10 = vector.broadcast %9 : vector<16x1xi32> to vector<16x256xi32>
    %11 = arith.cmpi eq, %10, %1 : vector<16x256xi32>
    %12 = arith.ori %6, %11 : vector<16x256xi1>
    %13 = vector.extract_strided_slice %0 {offsets = [0, 2], sizes = [16, 1], strides = [1, 1]} : vector<16x8xi32> to vector<16x1xi32>
    %14 = vector.shape_cast %13 : vector<16x1xi32> to vector<16xi32>
    %15 = vector.shape_cast %14 : vector<16xi32> to vector<16x1xi32>
    %16 = vector.broadcast %15 : vector<16x1xi32> to vector<16x256xi32>
    %17 = arith.cmpi eq, %16, %1 : vector<16x256xi32>
    %18 = arith.ori %12, %17 : vector<16x256xi1>
    %19 = vector.extract_strided_slice %0 {offsets = [0, 3], sizes = [16, 1], strides = [1, 1]} : vector<16x8xi32> to vector<16x1xi32>
    %20 = vector.shape_cast %19 : vector<16x1xi32> to vector<16xi32>
    %21 = vector.shape_cast %20 : vector<16xi32> to vector<16x1xi32>
    %22 = vector.broadcast %21 : vector<16x1xi32> to vector<16x256xi32>
    %23 = arith.cmpi eq, %22, %1 : vector<16x256xi32>
    %24 = arith.ori %18, %23 : vector<16x256xi1>
    %25 = vector.extract_strided_slice %0 {offsets = [0, 4], sizes = [16, 1], strides = [1, 1]} : vector<16x8xi32> to vector<16x1xi32>
    %26 = vector.shape_cast %25 : vector<16x1xi32> to vector<16xi32>
    %27 = vector.shape_cast %26 : vector<16xi32> to vector<16x1xi32>
    %28 = vector.broadcast %27 : vector<16x1xi32> to vector<16x256xi32>
    %29 = arith.cmpi eq, %28, %1 : vector<16x256xi32>
    %30 = arith.ori %24, %29 : vector<16x256xi1>
    %31 = vector.extract_strided_slice %0 {offsets = [0, 5], sizes = [16, 1], strides = [1, 1]} : vector<16x8xi32> to vector<16x1xi32>
    %32 = vector.shape_cast %31 : vector<16x1xi32> to vector<16xi32>
    %33 = vector.shape_cast %32 : vector<16xi32> to vector<16x1xi32>
    %34 = vector.broadcast %33 : vector<16x1xi32> to vector<16x256xi32>
    %35 = arith.cmpi eq, %34, %1 : vector<16x256xi32>
    %36 = arith.ori %30, %35 : vector<16x256xi1>
    %37 = vector.extract_strided_slice %0 {offsets = [0, 6], sizes = [16, 1], strides = [1, 1]} : vector<16x8xi32> to vector<16x1xi32>
    %38 = vector.shape_cast %37 : vector<16x1xi32> to vector<16xi32>
    %39 = vector.shape_cast %38 : vector<16xi32> to vector<16x1xi32>
    %40 = vector.broadcast %39 : vector<16x1xi32> to vector<16x256xi32>
    %41 = arith.cmpi eq, %40, %1 : vector<16x256xi32>
    %42 = arith.ori %36, %41 : vector<16x256xi1>
    %43 = vector.extract_strided_slice %0 {offsets = [0, 7], sizes = [16, 1], strides = [1, 1]} : vector<16x8xi32> to vector<16x1xi32>
    %44 = vector.shape_cast %43 : vector<16x1xi32> to vector<16xi32>
    %45 = vector.shape_cast %44 : vector<16xi32> to vector<16x1xi32>
    %46 = vector.broadcast %45 : vector<16x1xi32> to vector<16x256xi32>
    %47 = arith.cmpi eq, %46, %1 : vector<16x256xi32>
    %48 = arith.ori %42, %47 : vector<16x256xi1>
    %49 = arith.extui %48 : vector<16x256xi1> to vector<16x256xi32>
    %50 = arith.sitofp %49 : vector<16x256xi32> to vector<16x256xf32>
    %51 = arith.truncf %50 : vector<16x256xf32> to vector<16x256xbf16>
    %c0_1 = arith.constant 0 : index
    %c0_2 = arith.constant 0 : index
    %52 = vector.load %arg2[%c0_1, %c0_2] : memref<256x64xbf16, #tpu.memory_space<vmem>>, vector<256x64xbf16>
    %cst = arith.constant dense<0.000000e+00> : vector<16x64xf32>
    %53 = tpu.matmul %51, %52, %cst {dimension_numbers = #tpu.dot_dimension_numbers<[1], [0], [0], [1], [0, 0, 1, 1], [], []>} : vector<16x256xbf16>, vector<256x64xbf16>, vector<16x64xf32> -> vector<16x64xf32>
    %c0_3 = arith.constant 0 : index
    %c0_4 = arith.constant 0 : index
    %54 = vector.load %arg3[%c0_3, %c0_4] : memref<16x64xf32, #tpu.memory_space<vmem>>, vector<16x64xf32>
    %55 = arith.addf %53, %54 : vector<16x64xf32>
    %c0_5 = arith.constant 0 : index
    %c0_6 = arith.constant 0 : index
    %56 = vector.load %arg4[%c0_5, %c0_6] : memref<16x64xf32, #tpu.memory_space<vmem>>, vector<16x64xf32>
    tpu.vector_store %arg4[%c0_5, %c0_6], %55 {strides = array<i32>} : memref<16x64xf32, #tpu.memory_space<vmem>>, vector<16x64xf32>,
    return
  }
  func.func @transform_0(%arg0: i32) -> (i32, i32) {
    %c0_i32 = arith.constant 0 : i32
    %c0_i32_0 = arith.constant 0 : i32
    return %arg0, %c0_i32 : i32, i32
  }
  func.func @transform_1(%arg0: i32) -> (i32, i32) {
    %c0_i32 = arith.constant 0 : i32
    %c0_i32_0 = arith.constant 0 : i32
    %c0_i32_1 = arith.constant 0 : i32
    return %c0_i32, %c0_i32_0 : i32, i32
  }
  func.func @transform_2(%arg0: i32) -> (i32, i32) {
    %c0_i32 = arith.constant 0 : i32
    %c0_i32_0 = arith.constant 0 : i32
    %c0_i32_1 = arith.constant 0 : i32
    return %c0_i32, %c0_i32_0 : i32, i32
  }
  func.func @transform_3(%arg0: i32) -> (i32, i32) {
    %c0_i32 = arith.constant 0 : i32
    %c0_i32_0 = arith.constant 0 : i32
    return %arg0, %c0_i32 : i32, i32
  }
}

</mosaic_0001>

<bundles_post_ra>
// kernel: tpu_custom_call.1
= control target key start
LH: loop header
LB: loop body
LE: loop exit
PB: predicated region body
PF: predicated region fallthrough
CT: control target
= control target key end

     0   :  { %v436_v1 = vmov 1   ;;  %v437_v2 = vmov 0   ;;  %v438_v4 = vmov 2   ;;  %s607_s0 = inlined_call_operand.vmem [shape: s32[16,8], index: 0, kind: input, shape index: {}]   ;;  %s608_s1 = inlined_call_operand.vmem [shape: bf16[256,64], index: 1, kind: input, shape index: {}]   ;;  %s609_s2 = inlined_call_operand.vmem [shape: f32[16,64], index: 2, kind: input, shape index: {}]   ;;  %s610_s3 = inlined_call_operand.hbm [shape: f32[16,64], index: 3, kind: output, shape index: {}]  }
   0x1   :  { %v16_v0 = vld [vmem:[%s607_s0] sm:$0xff]  ;;  %384 = vset.pattern.permute.xlu1 %v436_v1  ;;  %383 = vset.pattern.permute.xlu0 %v437_v2  ;;  %v17_v3 = vld [vmem:[%s607_s0 + $0x8] sm:$0xff] }
   0x2   :  { %32 = vperm.xlu1 %384, %v16_v0   ;;  %22 = vperm.xlu0 %383, %v16_v0  }
   0x6   :  { %35 = vperm.xlu1 %384, %v17_v3   ;;  %25 = vperm.xlu0 %383, %v17_v3  }
   0xa   :  { %386 = vset.pattern.permute.xlu1 %v438_v4  ;;  %385 = vset.pattern.permute.xlu0 %v438_v4 }
   0xb   :  { %49 = vperm.xlu1 %386, %v17_v3   ;;  %46 = vperm.xlu0 %385, %v16_v0  }
   0xc   :  { %8 = vsyncpa [#allocation3], 0  ;;  %v439_v5 = vmov 3   ;;  %v396_v6 = vld [vmem:[%s608_s1 + $0x40] sm:$0xff]   ;;  %v440_v7 = vmov 4   ;;  %v441_v8 = vmov 5   ;;  %v18_v27 = vlaneseq }
   0xd   :  { %v397_v9 = vld [vmem:[%s608_s1] sm:$0xff]   ;;  %349 = vmatprep.subr.bf16.mxu0 %v396_v6  ;;  %v398_v10 = vld [vmem:[%s608_s1 + $0x48] sm:$0xff]   ;;  %v442_v12 = vmov 6   ;;  %v400_v13 = vld [vmem:[%s608_s1 + $0x50] sm:$0xff]   ;;  %v443_v16 = vmov 7   ;;  %v617_v41 = vmov 0 }
   0xe   :  { %350 = vmatpush3.bf16.msra.mxu0 %v397_v9  ;;  %v399_v11 = vld [vmem:[%s608_s1 + $0x8] sm:$0xff]   ;;  %v401_v14 = vld [vmem:[%s608_s1 + $0x10] sm:$0xff]   ;;  %v402_v15 = vld [vmem:[%s608_s1 + $0x58] sm:$0xff]   ;;  %v522_v30 = vand.u32 127, %v18_v27  ;;  %v620_v45 = vmov 0  ;;  %v444_v50 = vmov 0.0  }
   0xf   :  { %387 = vset.pattern.permute.xlu1 %v439_v5  ;;  %388 = vset.pattern.permute.xlu0 %v439_v5  ;;  %v403_v17 = vld [vmem:[%s608_s1 + $0x18] sm:$0xff]   ;;  %v404_v18 = vld [vmem:[%s608_s1 + $0x60] sm:$0xff]   ;;  %v406_v20 = vld [vmem:[%s608_s1 + $0x68] sm:$0xff]   ;;  %s445_s22 = smov [#allocation2]  }
  0x10   :  { %60 = vperm.xlu1 %387, %v16_v0   ;;  %63 = vperm.xlu0 %388, %v17_v3   ;;  %v405_v19 = vld [vmem:[%s608_s1 + $0x20] sm:$0xff]   ;;  %v407_v21 = vld [vmem:[%s608_s1 + $0x28] sm:$0xff]   ;;  %v408_v22 = vld [vmem:[%s608_s1 + $0x70] sm:$0xff]   ;;  %v525_v33 = vadd.s32 128, %v522_v30  ;;  %s318_s23 = sshll.u32 %s445_s22, 4  ;;  %s319_s23 = int_to_ptr.vmem [resolvable:$true] %s318_s23 }
  0x11   :  { %351 = vmatprep.subr.bf16.mxu0 %v398_v10  ;;  %v409_v23 = vld [vmem:[%s608_s1 + $0x30] sm:$0xff]   ;;  %v410_v24 = vld [vmem:[%s608_s1 + $0x78] sm:$0xff]   ;;  %v171_v58 = vld [vmem:[%s609_s2] sm:$0xff]  ;;  %s412_s24 = scalar_lea.vmem %s319_s23, 256  ;;  %p417_p1 = scmp.lt.s32.totalorder %s319_s23, %s319_s23 }
  0x12   :  { %352 = vmatpush3.bf16.msra.mxu0 %v399_v11  ;;  %v411_v25 = vld [vmem:[%s608_s1 + $0x38] sm:$0xff]   ;;  %v172_v62 = vld [vmem:[%s609_s2 + $0x8] sm:$0xff]  ;;  %p413_p0 = scmp.ne.s32.totalorder %s319_s23, %s412_s24  ;;  %p418_p2 = scmp.lt.s32.totalorder %s412_s24, %s412_s24 }
  0x13   :  { %353 = vmatprep.subr.bf16.mxu0 %v400_v13 }
  0x14   :  { %389 = vset.pattern.permute.xlu1 %v440_v7  ;;  %390 = vset.pattern.permute.xlu0 %v441_v8  ;;  %p419_p3 = por %p418_p2, %p417_p1 }
  0x15   :  { %74 = vperm.xlu1 %389, %v16_v0   ;;  %88 = vperm.xlu0 %390, %v16_v0  }
  0x16   :  { %354 = vmatpush3.bf16.msra.mxu0 %v401_v14  ;;  %p420_p4 = pnand %p419_p3, %p413_p0 }
  0x17   :  { %355 = vmatprep.subr.bf16.mxu0 %v402_v15 }
  0x19   :  { %77 = vperm.xlu1 %389, %v17_v3   ;;  %393 = vset.pattern.permute.xlu0 %v442_v12 }
  0x1a   :  { %105 = vperm.xlu0 %393, %v17_v3   ;;  %356 = vmatpush3.bf16.msra.mxu0 %v403_v17 }
  0x1b   :  { %357 = vmatprep.subr.bf16.mxu0 %v404_v18 }
  0x1d   :  { %391 = vset.pattern.permute.xlu1 %v441_v8 }
  0x1e   :  { %91 = vperm.xlu1 %391, %v17_v3   ;;  %395 = vset.pattern.permute.xlu0 %v443_v16 }
  0x1f   :  { %358 = vmatpush3.bf16.msra.mxu0 %v405_v19 }
  0x20   :  { %359 = vmatprep.subr.bf16.mxu0 %v406_v20 }
  0x22   :  { %392 = vset.pattern.permute.xlu1 %v442_v12 }
  0x23   :  { %102 = vperm.xlu1 %392, %v16_v0   ;;  %360 = vmatpush3.bf16.msra.mxu0 %v407_v21 }
  0x24   :  { %361 = vmatprep.subr.bf16.mxu0 %v408_v22 }
  0x27   :  { %394 = vset.pattern.permute.xlu1 %v443_v16  ;;  %362 = vmatpush3.bf16.msra.mxu0 %v409_v23 }
  0x28   :  { %116 = vperm.xlu1 %394, %v16_v0   ;;  %363 = vmatprep.subr.bf16.mxu0 %v410_v24 }
  0x2b   :  { %364 = vmatpush3.bf16.msra.mxu0 %v411_v25 }
  0x2c   :  { %119 = vperm.xlu1 %394, %v17_v3  }
  0x81   :  { %v33_v26 = vpop.permute.xlu1 %32  ;;  %v23_v28 = vpop.permute.xlu0 %22 }
  0x82   :  { %vm37_vm0 = vcmp.eq.s32.totalorder %v33_v26, %v522_v30  ;;  %vm27_vm1 = vcmp.eq.s32.totalorder %v23_v28, %v522_v30  ;;  %vm38_vm2 = vcmp.eq.s32.totalorder %v33_v26, %v525_v33  ;;  %vm28_vm3 = vcmp.eq.s32.totalorder %v23_v28, %v525_v33 }
  0x83   :  { %vm533_vm6 = vmor %vm27_vm1, %vm37_vm0 }
  0x84   :  { %vm539_vm9 = vmor %vm28_vm3, %vm38_vm2 }
  0x85   :  { %v36_v29 = vpop.permute.xlu1 %35  ;;  %v26_v32 = vpop.permute.xlu0 %25 }
  0x86   :  { %vm39_vm4 = vcmp.eq.s32.totalorder %v36_v29, %v522_v30  ;;  %vm29_vm5 = vcmp.eq.s32.totalorder %v26_v32, %v522_v30  ;;  %vm40_vm7 = vcmp.eq.s32.totalorder %v36_v29, %v525_v33  ;;  %vm30_vm8 = vcmp.eq.s32.totalorder %v26_v32, %v525_v33 }
  0x87   :  { %vm43_vm11 = vmor %vm29_vm5, %vm39_vm4 }
  0x88   :  { %vm44_vm13 = vmor %vm30_vm8, %vm40_vm7 }
  0x8a   :  { %v50_v31 = vpop.permute.xlu1 %49  ;;  %v47_v35 = vpop.permute.xlu0 %46 }
  0x8b   :  { %vm53_vm10 = vcmp.eq.s32.totalorder %v50_v31, %v522_v30  ;;  %vm54_vm12 = vcmp.eq.s32.totalorder %v50_v31, %v525_v33  ;;  %vm51_vm14 = vcmp.eq.s32.totalorder %v47_v35, %v522_v30  ;;  %vm52_vm0 = vcmp.eq.s32.totalorder %v47_v35, %v525_v33 }
  0x8c   :  { %vm546_vm15 = vmor %vm43_vm11, %vm53_vm10 }
  0x8d   :  { %vm551_vm1 = vmor %vm44_vm13, %vm54_vm12 }
  0x8e   :  { %v618_v41 = vsel %vm551_vm1, 4294967295, %v617_v41  ;;  %vm55_vm3 = vmor %vm533_vm6, %vm51_vm14 }
  0x8f   :  { %v61_v34 = vpop.permute.xlu1 %60  ;;  %v64_v40 = vpop.permute.xlu0 %63  ;;  %vm56_vm5 = vmor %vm539_vm9, %vm52_vm0  ;;  %vm619_vm9 = vnez %v618_v41 }
  0x90   :  { %vm65_vm2 = vcmp.eq.s32.totalorder %v61_v34, %v522_v30  ;;  %vm66_vm4 = vcmp.eq.s32.totalorder %v61_v34, %v525_v33  ;;  %vm67_vm7 = vcmp.eq.s32.totalorder %v64_v40, %v522_v30  ;;  %vm68_vm12 = vcmp.eq.s32.totalorder %v64_v40, %v525_v33 }
  0x91   :  { %vm69_vm8 = vmor %vm55_vm3, %vm65_vm2 }
  0x92   :  { %vm70_vm11 = vmor %vm56_vm5, %vm66_vm4 }
  0x93   :  { %vm71_vm13 = vmor %vm546_vm15, %vm67_vm7 }
  0x94   :  { %v75_v38 = vpop.permute.xlu1 %74  ;;  %v89_v43 = vpop.permute.xlu0 %88  ;;  %vm72_vm0 = vmor %vm619_vm9, %vm68_vm12 }
  0x95   :  { %vm79_vm10 = vcmp.eq.s32.totalorder %v75_v38, %v522_v30  ;;  %vm80_vm1 = vcmp.eq.s32.totalorder %v75_v38, %v525_v33  ;;  %vm93_vm14 = vcmp.eq.s32.totalorder %v89_v43, %v522_v30 }
  0x96   :  { %vm83_vm6 = vmor %vm69_vm8, %vm79_vm10  ;;  %vm94_vm10 = vcmp.eq.s32.totalorder %v89_v43, %v525_v33 }
  0x97   :  { %vm84_vm3 = vmor %vm70_vm11, %vm80_vm1 }
  0x98   :  { %v78_v42 = vpop.permute.xlu1 %77  ;;  %vm572_vm5 = vmor %vm83_vm6, %vm93_vm14 }
  0x99   :  { %vm81_vm2 = vcmp.eq.s32.totalorder %v78_v42, %v522_v30  ;;  %vm82_vm4 = vcmp.eq.s32.totalorder %v78_v42, %v525_v33  ;;  %v621_v45 = vsel %vm572_vm5, 4294967295, %v620_v45  ;;  %v106_v46 = vpop.permute.xlu0 %105  ;;  %vm98_vm14 = vmor %vm84_vm3, %vm94_vm10 }
  0x9a   :  { %vm85_vm7 = vmor %vm71_vm13, %vm81_vm2  ;;  %vm109_vm1 = vcmp.eq.s32.totalorder %v106_v46, %v522_v30  ;;  %vm110_vm6 = vcmp.eq.s32.totalorder %v106_v46, %v525_v33 }
  0x9b   :  { %vm86_vm9 = vmor %vm72_vm0, %vm82_vm4 }
  0x9d   :  { %v92_v44 = vpop.permute.xlu1 %91 }
  0x9e   :  { %vm95_vm15 = vcmp.eq.s32.totalorder %v92_v44, %v522_v30  ;;  %vm96_vm8 = vcmp.eq.s32.totalorder %v92_v44, %v525_v33 }
  0x9f   :  { %vm99_vm12 = vmor %vm85_vm7, %vm95_vm15  ;;  %vm622_vm7 = vnez %v621_v45 }
  0xa0   :  { %vm100_vm11 = vmor %vm86_vm9, %vm96_vm8 }
  0xa1   :  { %vm113_vm2 = vmor %vm99_vm12, %vm109_vm1 }
  0xa2   :  { %v103_v47 = vpop.permute.xlu1 %102  ;;  %vm114_vm0 = vmor %vm100_vm11, %vm110_vm6 }
  0xa3   :  { %vm107_vm5 = vcmp.eq.s32.totalorder %v103_v47, %v522_v30  ;;  %vm108_vm13 = vcmp.eq.s32.totalorder %v103_v47, %v525_v33 }
  0xa4   :  { %vm111_vm15 = vmor %vm622_vm7, %vm107_vm5  ;;  %vm310_vm5 = vcmask 523264  }
  0xa5   :  { %vm112_vm9 = vmor %vm98_vm14, %vm108_vm13 }
  0xa7   :  { %v117_v48 = vpop.permute.xlu1 %116 }
  0xa8   :  { %vm121_vm4 = vcmp.eq.s32.totalorder %v117_v48, %v522_v30  ;;  %vm122_vm8 = vcmp.eq.s32.totalorder %v117_v48, %v525_v33 }
  0xa9   :  { %vm125_vm3 = vmor %vm111_vm15, %vm121_vm4 }
  0xaa   :  { %vm126_vm12 = vmor %vm112_vm9, %vm122_vm8  ;;  %v329_v51 = vsel %vm125_vm3, 1.0, %v444_v50 }
  0xab   :  { %v120_v49 = vpop.permute.xlu1 %119  ;;  %v330_v54 = vsel %vm126_vm12, 1.0, %v444_v50 }
  0xac   :  { %vm123_vm10 = vcmp.eq.s32.totalorder %v120_v49, %v522_v30  ;;  %vm124_vm1 = vcmp.eq.s32.totalorder %v120_v49, %v525_v33 }
  0xad   :  { %vm127_vm6 = vmor %vm113_vm2, %vm123_vm10 }
  0xae   :  { %vm128_vm11 = vmor %vm114_vm0, %vm124_vm1  ;;  %v331_v52 = vsel %vm127_vm6, 1.0, %v444_v50 }
  0xaf   :  { %v137_v53 = vpack.c.bf16 %v331_v52, %v329_v51  ;;  %v332_v55 = vsel %vm128_vm11, 1.0, %v444_v50 }
  0xb0   :  { %v138_v56 = vpack.c.bf16 %v332_v55, %v330_v54 }
  0xb2   :  { %301 = vmatprep.mubr.bf16.mxu0 %v138_v56 }
  0xb3   :  { %302 = vmatmul.mubr.bf16.vlgmr.msra.gmra.mrb[0].mxu0 %v137_v53 }
 0x186   :  { %v365_v57 = vpop.f32.mrb[0].mxu0 }
 0x187   :  { %v366_v59 = vpop.f32.mrb[1].mxu0 }
 0x188   :  { %v367_v60 = vadd.f32 %v366_v59, %v365_v57  ;;  %v368_v61 = vpop.f32.mrb[2].mxu0 }
 0x189   :  { %v369_v63 = vpop.f32.mrb[3].mxu0 }
 0x18a   :  { %v304_v0 = vadd.f32 %v367_v60, %v171_v58  ;;  %v370_v1 = vadd.f32 %v369_v63, %v368_v61 }
 0x18c   :  { %311 = vst.msk [vmem:[#allocation2] sm:$0xff] %vm310_vm5, %v304_v0  ;;  %v307_v2 = vadd.f32 %v370_v1, %v172_v62 }
 0x18e   :  { %312 = vst.msk [vmem:[#allocation2 + $0x8] sm:$0xff] %vm310_vm5, %v307_v2 }
 0x18f   :  { %423 = shalt.err (!%p420_p4)
}
 0x190   :  { %s424_s2 = scalar_lea.hbm %s610_s3, 256 }
 0x191   :  { %p425_p5 = scmp.ne.s32.totalorder %s610_s3, %s424_s2  ;;  %p428_p6 = scmp.lt.u32.totalorder %s424_s2, %s610_s3 }
 0x193   :  { %p430_p7 = pnand %p428_p6, %p425_p5 }
 0x195   :  { %433 = shalt.err (!%p430_p7)
}
 0x196   :  { %s446_s4 = smov 128   ;;  %s447_s5 = smov 8  }
 0x197   :  { %324 = dma.vmem_to_hbm [thread:$0]  %s319_s23, 256, %s610_s3, [#allocation3], %s446_s4, %s446_s4, %s447_s5  }
 0x198   :  { %434 = dma.done.wait [#allocation3], 256  }
 0x199   :  { %435 = vsyncadd [#allocation3], 4294967040 }
 0x19a   :  { %328 = vsyncpa [#allocation3], 1 }

</bundles_post_ra>
